<compile_context>
chip_gen: v7x
topology: tpu7x:2x2x1
jax: 0.10.0
libtpu: 0.0.40
codegen_flags: <defaults>
</compile_context>

<pallas_src>
import functools

import jax
import jax.numpy as jnp
from jax import lax
from jax.experimental import pallas as pl
from jax.experimental.pallas import tpu as pltpu

BN_EPS = 1e-5
_MXU_MIN_C = 256          # use the MXU for the first Linear at/above this C


def _round_up(x, m):
    return ((x + m - 1) // m) * m


def _vmem_capacity_bytes():
    try:
        info = pltpu.get_tpu_info()
        cap = getattr(info, "vmem_capacity_bytes", None)
        if cap:
            return int(cap)
    except Exception:
        pass
    # Conservative fallback: v7x has the smallest per-core VMEM (64 MiB).
    return 64 << 20


def _pick_batch_tile(n):
    # 8-row batch tiles keep the output block sublane-aligned and give the
    # "parallel" grid axis >= 2 steps for N >= 16 so both of v7x's TensorCores
    # stream.  TODO(synk): for N <= 8 (or N not a multiple of 8) the parallel
    # axis collapses to a single step and one v7x core idles; shard the
    # spatial reduction across cores instead if those batch shapes matter.
    if n % 8 == 0 and n > 8:
        return 8
    return n


def _pick_hw_tile(hw, granule, bytes_per_pos, budget_bytes, pos_cap):
    """Largest reduce-axis tile (multiple of `granule`, <= hw) under budget."""
    if hw <= granule:
        # Whole spatial extent in one full-dim block (allowed by the
        # (8, 128)-or-full-dim rule); no padding, no extra grid steps.
        return hw
    max_pos = min(pos_cap, budget_bytes // max(1, bytes_per_pos))
    max_pos = max(granule, (max_pos // granule) * granule)
    hw_floor = (hw // granule) * granule
    return min(hw_floor, max_pos)


def _gate_kernel(x_ref, w1_ref, b1_ref, w2_ref, b2_ref, out_ref, acc_ref, *,
                 channels_last, tail_len, inv_hw):
    """One (batch-tile, spatial-chunk) grid step of the SimpleGate head.

    x_ref:   (tn, t_hw, C) block if channels_last else (tn, C, t_hw), native
             dtype (bf16 inputs stream half the HBM bytes).
    acc_ref: tile-resident f32 partial-sum scratch, (tn, g, C) with g <= 8 for
             channels_last, (tn, C, g) with g <= 128 otherwise; persists over
             the reduction (last) grid axis.
    """
    k = pl.program_id(1)
    last = pl.num_programs(1) - 1

    @pl.when(k == 0)
    def _init():
        acc_ref[...] = jnp.zeros_like(acc_ref)

    if channels_last:
        tn, t_hw, c = x_ref.shape
        g = acc_ref.shape[1]

        def accum(valid_len):
            # Fold `valid_len` spatial rows into the (tn, g, C) accumulator.
            # Splitting the sublane axis at its native tile boundary is a free
            # reshape, so the axis=1 sum is plain cross-vreg VPU adds with f32
            # accumulation (no full-block f32 upcast, no per-step XLU reduce).
            n_full = valid_len // g
            rem = valid_len - n_full * g
            if n_full > 0:
                xs = x_ref[:, 0:n_full * g, :]
                acc_ref[...] += jnp.sum(xs.reshape(tn, n_full, g, c),
                                        axis=1, dtype=jnp.float32)
            if rem > 0:
                # Static partial group at the end of the valid region: mask the
                # rows Pallas never fetched for this boundary block.
                xr = x_ref[:, n_full * g:(n_full + 1) * g, :]
                row = lax.broadcasted_iota(jnp.int32, xr.shape, 1)
                acc_ref[...] += jnp.where(
                    row < rem, xr, jnp.zeros_like(xr)).astype(jnp.float32)
    else:
        tn, c, t_hw = x_ref.shape
        g = acc_ref.shape[2]

        def accum(valid_len):
            # Lane-resident accumulation: 128-lane slabs are sliced at vreg
            # boundaries (free) and added on the VPU; the single 128 -> 1 lane
            # reduce happens once in the epilogue, not in the hot loop.
            n_full = valid_len // g
            rem = valid_len - n_full * g
            s = None
            if n_full > 0:
                s = x_ref[:, :, 0:g].astype(jnp.float32)
                for j in range(1, n_full):
                    s = s + x_ref[:, :, j * g:(j + 1) * g].astype(jnp.float32)
            if rem > 0:
                xr = x_ref[:, :, n_full * g:(n_full + 1) * g]
                lane = lax.broadcasted_iota(jnp.int32, xr.shape, 2)
                xm = jnp.where(lane < rem, xr,
                               jnp.zeros_like(xr)).astype(jnp.float32)
                s = xm if s is None else s + xm
            acc_ref[...] += s

    if tail_len == t_hw:
        accum(t_hw)
    else:
        # HW is not a multiple of t_hw: only the last step holds a partial
        # block, and its valid length is static, so it is masked in-kernel
        # instead of paying a zero-padding pass over x in the wrapper.
        @pl.when(k < last)
        def _full_step():
            accum(t_hw)

        @pl.when(k == last)
        def _tail_step():
            accum(tail_len)

    @pl.when(k == last)
    def _epilogue():
        if channels_last:
            pooled = jnp.sum(acc_ref[...], axis=1) * inv_hw          # (tn, C)
        else:
            pooled = jnp.sum(acc_ref[...], axis=2) * inv_hw          # (tn, C)

        w1 = w1_ref[...]                                             # (C, hid)
        if c >= _MXU_MIN_C:
            # Realistic backbone head (large C): one MXU matmul keeps the
            # pl.when tail short and avoids a (tn, C, hid) f32 intermediate.
            h = jnp.dot(pooled, w1, preferred_element_type=jnp.float32)
        else:
            # Tiny C: VPU broadcast-FMA, intermediate is only (tn, C, hid).
            h = jnp.sum(pooled[:, :, None] * w1[None, :, :], axis=1)
        h = jnp.maximum(h + b1_ref[...], 0.0)                        # (tn, hid)

        w2 = w2_ref[...]                                             # (hid, out)
        y = jnp.sum(h[:, :, None] * w2[None, :, :], axis=1) + b2_ref[...]
        out_ref[...] = jax.nn.sigmoid(y)


def similarity_exit_gate_forward(x, params, *, channels_last=False,
                                 max_block_bytes=None):
    """Gate head of SimilarityExitModule (SimpleGate, eval-mode BN).

    x: (N, C, H, W) if channels_last=False (PyTorch NCHW, default) or
       (N, H, W, C) if channels_last=True (preferred for backbone-sized
       feature maps with C a multiple of 128: zero streamed padding).
    Returns torch.sigmoid(net(avg_pool(x))).squeeze() as in the module.
    """
    if channels_last:
        N, H, W, C = x.shape
        x3 = x.reshape(N, H * W, C)          # C stays on the lane (minor) axis
    else:
        N, C, H, W = x.shape
        x3 = x.reshape(N, C, H * W)
    HW = H * W

    w1, b1, gamma, beta, rmean, rvar, w2, b2 = params
    hid = w1.shape[1]
    out_dims = w2.shape[1]

    # Fold eval-mode BatchNorm1d into the first Linear (tiny, wrapper-side).
    scale = gamma.astype(jnp.float32) * lax.rsqrt(
        rvar.astype(jnp.float32) + BN_EPS)
    w1f = w1.astype(jnp.float32) * scale[None, :]                    # (C, hid)
    b1f = ((b1.astype(jnp.float32) - rmean.astype(jnp.float32)) * scale
           + beta.astype(jnp.float32)).reshape(1, hid)
    w2f = w2.astype(jnp.float32)                                     # (hid,out)
    b2f = b2.astype(jnp.float32).reshape(1, out_dims)

    itemsize = x3.dtype.itemsize
    tn = _pick_batch_tile(N)
    granule = 8 if channels_last else 128
    c_sub = _round_up(C, 8)
    c_lane = _round_up(C, 128)

    # Generation-aware VMEM budgeting (v7x: 64 MiB, v5e/v6e: 128 MiB).
    cap = _vmem_capacity_bytes()
    if channels_last:
        acc_bytes = 4 * tn * 8 * c_lane
        bytes_per_pos = tn * c_lane * itemsize
        pos_cap = 1 << 22
    else:
        acc_bytes = 4 * tn * c_sub * 128
        bytes_per_pos = tn * c_sub * itemsize
        pos_cap = 64 * 128            # bounds the unrolled slab-add loop
    param_bytes = 8 * (C * hid + 2 * hid + hid * out_dims + 2 * out_dims)
    slack = 4 << 20
    # Budget for 2x double-buffered x blocks plus (conservatively) one f32
    # reduce temporary of the block (matters for bf16 inputs on v7x's 64 MiB).
    weight = 2.0 + 4.0 / itemsize
    auto_block = int((0.8 * cap - acc_bytes - param_bytes - slack) / weight)
    auto_block = max(auto_block, 2 << 20)
    block_budget = auto_block if max_block_bytes is None else min(
        int(max_block_bytes), auto_block)

    t_hw = _pick_hw_tile(HW, granule, bytes_per_pos, block_budget, pos_cap)
    n_steps = -(-HW // t_hw)
    tail_len = HW - (n_steps - 1) * t_hw
    grid = (N // tn, n_steps)            # spatial reduction axis last

    if channels_last:
        x_spec = pl.BlockSpec((tn, t_hw, C), lambda n, k: (n, k, 0))
        acc_shape = (tn, min(8, t_hw), C)
        x_block_bytes = tn * _round_up(t_hw, 8) * c_lane * itemsize
    else:
        x_spec = pl.BlockSpec((tn, C, t_hw), lambda n, k: (n, 0, k))
        acc_shape = (tn, C, min(128, t_hw))
        x_block_bytes = tn * c_sub * _round_up(t_hw, 128) * itemsize

    vmem_limit = int(min(x_block_bytes * weight + acc_bytes + param_bytes
                         + slack, 0.8 * cap))
    vmem_limit = max(vmem_limit, 8 << 20)

    cost = pl.CostEstimate(
        flops=2 * N * C * HW + 2 * N * C * hid + 2 * N * hid * out_dims,
        transcendentals=N * out_dims,
        bytes_accessed=(x3.size * itemsize
                        + 4 * (w1f.size + b1f.size + w2f.size + b2f.size)
                        + 4 * N * out_dims),
    )

    kernel = functools.partial(_gate_kernel,
                               channels_last=channels_last,
                               tail_len=tail_len,
                               inv_hw=float(1.0 / HW))

    out = pl.pallas_call(
        kernel,
        out_shape=jax.ShapeDtypeStruct((N, out_dims), jnp.float32),
        grid_spec=pltpu.PrefetchScalarGridSpec(
            num_scalar_prefetch=0,
            grid=grid,
            in_specs=[
                x_spec,
                pl.BlockSpec((C, hid), lambda n, k: (0, 0)),
                pl.BlockSpec((1, hid), lambda n, k: (0, 0)),
                pl.BlockSpec((hid, out_dims), lambda n, k: (0, 0)),
                pl.BlockSpec((1, out_dims), lambda n, k: (0, 0)),
            ],
            out_specs=pl.BlockSpec((tn, out_dims), lambda n, k: (n, 0)),
            scratch_shapes=[pltpu.VMEM(acc_shape, jnp.float32)],
        ),
        compiler_params=pltpu.CompilerParams(
            dimension_semantics=("parallel", "arbitrary"),
            vmem_limit_bytes=vmem_limit,
        ),
        cost_estimate=cost,
    )(x3, w1f, b1f, w2f, b2f)

    # torch.sigmoid(x).squeeze()
    return jnp.squeeze(out)


def init_params(key, in_dims, hid_dims=16, output_dims=1):
    """Deterministic synthetic parameters (no checkpoint load)."""
    k1, k2, k3, k4, k5, k6, k7, k8 = jax.random.split(key, 8)
    w1 = jax.random.normal(k1, (in_dims, hid_dims), jnp.float32) * 0.1
    b1 = jax.random.normal(k2, (hid_dims,), jnp.float32) * 0.01
    gamma = 1.0 + 0.1 * jax.random.normal(k3, (hid_dims,), jnp.float32)
    beta = 0.05 * jax.random.normal(k4, (hid_dims,), jnp.float32)
    rmean = 0.02 * jax.random.normal(k5, (hid_dims,), jnp.float32)
    rvar = jnp.abs(1.0 + 0.1 * jax.random.normal(k6, (hid_dims,), jnp.float32))
    w2 = jax.random.normal(k7, (hid_dims, output_dims), jnp.float32) * 0.1
    b2 = 0.01 * jax.random.normal(k8, (output_dims,), jnp.float32)
    return (w1, b1, gamma, beta, rmean, rvar, w2, b2)


def _reference(x_nchw, params):
    """Pure-JAX reference of the PyTorch SimpleGate forward (eval-mode BN)."""
    w1, b1, gamma, beta, rmean, rvar, w2, b2 = params
    pooled = jnp.mean(x_nchw.astype(jnp.float32), axis=(2, 3))
    h = pooled @ w1 + b1
    h = (h - rmean) / jnp.sqrt(rvar + BN_EPS) * gamma + beta
    h = jnp.maximum(h, 0.0)
    return jnp.squeeze(jax.nn.sigmoid(h @ w2 + b2))


if __name__ == "__main__":
    key = jax.random.PRNGKey(0)
    k1, k2, k3, k4, k5, k6 = jax.random.split(key, 6)

    # Test 1: module-sized NCHW f32 input (channels-first path, single step).
    N, C, H, W = 2, 4, 16, 16
    x = jax.random.normal(k1, (N, C, H, W), jnp.float32)
    params = init_params(k2, in_dims=C, hid_dims=16, output_dims=1)
    out1 = jax.block_until_ready(similarity_exit_gate_forward(x, params))
    ref1 = _reference(x, params)
    assert out1.shape == ref1.shape == (N,)
    assert jnp.allclose(out1, ref1, atol=1e-5, rtol=1e-4)

    # Test 2: odd spatial size + tiny block budget -> multi-step reduction with
    # an in-kernel-masked partial tail block and >= 2 batch tiles (NCHW).
    N2, C2, H2, W2 = 16, 8, 15, 15
    x2 = jax.random.normal(k3, (N2, C2, H2, W2), jnp.float32)
    params2 = init_params(k4, in_dims=C2, hid_dims=16, output_dims=1)
    out2 = jax.block_until_ready(
        similarity_exit_gate_forward(x2, params2, max_block_bytes=32 * 1024))
    ref2 = _reference(x2, params2)
    assert out2.shape == (N2,)
    assert jnp.allclose(out2, ref2, atol=1e-5, rtol=1e-4)

    # Test 3: channels-last bf16 input, C a multiple of 128, 7x7 spatial (the
    # realistic backbone-head shape): lane-dense streaming + MXU epilogue.
    N3, H3, W3, C3 = 16, 7, 7, 256
    x3f = jax.random.normal(k5, (N3, H3, W3, C3), jnp.float32)
    x3 = x3f.astype(jnp.bfloat16)
    params3 = init_params(k6, in_dims=C3, hid_dims=16, output_dims=1)
    out3 = jax.block_until_ready(
        similarity_exit_gate_forward(x3, params3, channels_last=True))
    ref3 = _reference(jnp.transpose(x3.astype(jnp.float32), (0, 3, 1, 2)),
                      params3)
    assert out3.shape == (N3,)
    assert jnp.allclose(out3, ref3, atol=2e-3, rtol=2e-3)

    # Test 4: same input, tiny block budget -> many sublane-axis reduction
    # steps with a masked 1-row tail (channels-last path).
    out4 = jax.block_until_ready(
        similarity_exit_gate_forward(x3, params3, channels_last=True,
                                     max_block_bytes=8 * 1024))
    assert jnp.allclose(out4, ref3, atol=2e-3, rtol=2e-3)

    print("KERNEL_OK")
</pallas_src>

<mosaic_0001>
module attributes {stable_mosaic.version = 11 : i64} {
  func.func @_gate_kernel(%arg0: i32, %arg1: i32, %arg2: memref<2x4x256xf32, #tpu.memory_space<vmem>>, %arg3: memref<4x16xf32, #tpu.memory_space<vmem>>, %arg4: memref<1x16xf32, #tpu.memory_space<vmem>>, %arg5: memref<16x1xf32, #tpu.memory_space<vmem>>, %arg6: memref<1x1xf32, #tpu.memory_space<vmem>>, %arg7: memref<2x1xf32, #tpu.memory_space<vmem>>, %arg8: memref<2x4x128xf32, #tpu.memory_space<vmem>>) attributes {dimension_semantics = [#tpu.dimension_semantics<parallel>, #tpu.dimension_semantics<arbitrary>], iteration_bounds = array<i64: 1, 1>, scalar_prefetch = 0 : i64, scratch_operands = 1 : i64, tpu.core_type = #tpu.core_type<tc>, window_params = [{transform_indices = @transform_0, window_bounds = array<i64: 2, 4, 256>}, {pipeline_mode = #tpu.pipeline_mode<synchronous>, transform_indices = @transform_1, window_bounds = array<i64: 4, 16>}, {pipeline_mode = #tpu.pipeline_mode<synchronous>, transform_indices = @transform_2, window_bounds = array<i64: 1, 16>}, {pipeline_mode = #tpu.pipeline_mode<synchronous>, transform_indices = @transform_3, window_bounds = array<i64: 16, 1>}, {pipeline_mode = #tpu.pipeline_mode<synchronous>, transform_indices = @transform_4, window_bounds = array<i64: 1, 1>}, {transform_indices = @transform_5, window_bounds = array<i64: 2, 1>}]} {
    %c0_i32 = arith.constant 0 : i32
    %0 = arith.cmpi eq, %arg1, %c0_i32 : i32
    %1 = arith.extui %0 : i1 to i32
    %c0_i32_0 = arith.constant 0 : i32
    %2 = arith.cmpi ne, %1, %c0_i32_0 : i32
    scf.if %2 {
      %cst = arith.constant 0.000000e+00 : f32
      %12 = vector.broadcast %cst : f32 to vector<2x4x128xf32>
      %c0_13 = arith.constant 0 : index
      %c0_14 = arith.constant 0 : index
      %c0_15 = arith.constant 0 : index
      %13 = vector.load %arg8[%c0_13, %c0_14, %c0_15] : memref<2x4x128xf32, #tpu.memory_space<vmem>>, vector<2x4x128xf32>
      tpu.vector_store %arg8[%c0_13, %c0_14, %c0_15], %12 {strides = array<i32>} : memref<2x4x128xf32, #tpu.memory_space<vmem>>, vector<2x4x128xf32>,
    } else {
    }
    %c0 = arith.constant 0 : index
    %c0_1 = arith.constant 0 : index
    %c0_2 = arith.constant 0 : index
    %3 = vector.load %arg2[%c0, %c0_1, %c0_2] : memref<2x4x256xf32, #tpu.memory_space<vmem>>, vector<2x4x128xf32>
    %c0_3 = arith.constant 0 : index
    %c0_4 = arith.constant 0 : index
    %c128 = arith.constant 128 : index
    %4 = vector.load %arg2[%c0_3, %c0_4, %c128] : memref<2x4x256xf32, #tpu.memory_space<vmem>>, vector<2x4x128xf32>
    %5 = arith.addf %3, %4 : vector<2x4x128xf32>
    %c0_5 = arith.constant 0 : index
    %c0_6 = arith.constant 0 : index
    %c0_7 = arith.constant 0 : index
    %6 = vector.load %arg8[%c0_5, %c0_6, %c0_7] : memref<2x4x128xf32, #tpu.memory_space<vmem>>, vector<2x4x128xf32>
    %7 = arith.addf %6, %5 : vector<2x4x128xf32>
    %c0_8 = arith.constant 0 : index
    %c0_9 = arith.constant 0 : index
    %c0_10 = arith.constant 0 : index
    %8 = vector.load %arg8[%c0_8, %c0_9, %c0_10] : memref<2x4x128xf32, #tpu.memory_space<vmem>>, vector<2x4x128xf32>
    tpu.vector_store %arg8[%c0_8, %c0_9, %c0_10], %7 {strides = array<i32>} : memref<2x4x128xf32, #tpu.memory_space<vmem>>, vector<2x4x128xf32>,
    %c0_i32_11 = arith.constant 0 : i32
    %9 = arith.cmpi eq, %arg1, %c0_i32_11 : i32
    %10 = arith.extui %9 : i1 to i32
    %c0_i32_12 = arith.constant 0 : i32
    %11 = arith.cmpi ne, %10, %c0_i32_12 : i32
    scf.if %11 {
      %c0_13 = arith.constant 0 : index
      %c0_14 = arith.constant 0 : index
      %c0_15 = arith.constant 0 : index
      %12 = vector.load %arg8[%c0_13, %c0_14, %c0_15] : memref<2x4x128xf32, #tpu.memory_space<vmem>>, vector<2x4x128xf32>
      %cst = arith.constant dense<0.000000e+00> : vector<2x4xf32>
      %13 = vector.multi_reduction <add>, %12, %cst [2] : vector<2x4x128xf32> to vector<2x4xf32>
      %cst_16 = arith.constant 3.906250e-03 : f32
      %14 = vector.broadcast %cst_16 : f32 to vector<2x4xf32>
      %15 = arith.mulf %13, %14 : vector<2x4xf32>
      %c0_17 = arith.constant 0 : index
      %c0_18 = arith.constant 0 : index
      %16 = vector.load %arg3[%c0_17, %c0_18] : memref<4x16xf32, #tpu.memory_space<vmem>>, vector<4x16xf32>
      %17 = vector.shape_cast %15 : vector<2x4xf32> to vector<2x4x1xf32>
      %18 = vector.shape_cast %16 : vector<4x16xf32> to vector<1x4x16xf32>
      %19 = vector.broadcast %17 : vector<2x4x1xf32> to vector<2x4x16xf32>
      %20 = vector.broadcast %18 : vector<1x4x16xf32> to vector<2x4x16xf32>
      %21 = arith.mulf %19, %20 : vector<2x4x16xf32>
      %cst_19 = arith.constant dense<0.000000e+00> : vector<2x16xf32>
      %22 = vector.multi_reduction <add>, %21, %cst_19 [1] : vector<2x4x16xf32> to vector<2x16xf32>
      %c0_20 = arith.constant 0 : index
      %c0_21 = arith.constant 0 : index
      %23 = vector.load %arg4[%c0_20, %c0_21] : memref<1x16xf32, #tpu.memory_space<vmem>>, vector<1x16xf32>
      %24 = vector.broadcast %23 : vector<1x16xf32> to vector<2x16xf32>
      %25 = arith.addf %22, %24 : vector<2x16xf32>
      %cst_22 = arith.constant 0.000000e+00 : f32
      %26 = vector.broadcast %cst_22 : f32 to vector<2x16xf32>
      %27 = arith.maximumf %25, %26 : vector<2x16xf32>
      %c0_23 = arith.constant 0 : index
      %c0_24 = arith.constant 0 : index
      %28 = vector.load %arg5[%c0_23, %c0_24] : memref<16x1xf32, #tpu.memory_space<vmem>>, vector<16x1xf32>
      %29 = vector.shape_cast %27 : vector<2x16xf32> to vector<2x16x1xf32>
      %30 = vector.shape_cast %28 : vector<16x1xf32> to vector<1x16x1xf32>
      %31 = vector.broadcast %30 : vector<1x16x1xf32> to vector<2x16x1xf32>
      %32 = arith.mulf %29, %31 : vector<2x16x1xf32>
      %cst_25 = arith.constant dense<0.000000e+00> : vector<2x1xf32>
      %33 = vector.multi_reduction <add>, %32, %cst_25 [1] : vector<2x16x1xf32> to vector<2x1xf32>
      %c0_26 = arith.constant 0 : index
      %c0_27 = arith.constant 0 : index
      %34 = vector.load %arg6[%c0_26, %c0_27] : memref<1x1xf32, #tpu.memory_space<vmem>>, vector<1x1xf32>
      %35 = vector.broadcast %34 : vector<1x1xf32> to vector<2x1xf32>
      %36 = arith.addf %33, %35 : vector<2x1xf32>
      %37 = arith.negf %36 : vector<2x1xf32>
      %38 = math.exp %37 : vector<2x1xf32>
      %cst_28 = arith.constant 1.000000e+00 : f32
      %39 = vector.broadcast %cst_28 : f32 to vector<2x1xf32>
      %40 = arith.addf %39, %38 : vector<2x1xf32>
      %41 = arith.divf %39, %40 : vector<2x1xf32>
      %c0_29 = arith.constant 0 : index
      %c0_30 = arith.constant 0 : index
      %42 = vector.load %arg7[%c0_29, %c0_30] : memref<2x1xf32, #tpu.memory_space<vmem>>, vector<2x1xf32>
      tpu.vector_store %arg7[%c0_29, %c0_30], %41 {strides = array<i32>} : memref<2x1xf32, #tpu.memory_space<vmem>>, vector<2x1xf32>,
    } else {
    }
    return
  }
  func.func @transform_0(%arg0: i32, %arg1: i32) -> (i32, i32, i32) {
    %c0_i32 = arith.constant 0 : i32
    %c0_i32_0 = arith.constant 0 : i32
    return %arg0, %c0_i32, %arg1 : i32, i32, i32
  }
  func.func @transform_1(%arg0: i32, %arg1: i32) -> (i32, i32) {
    %c0_i32 = arith.constant 0 : i32
    %c0_i32_0 = arith.constant 0 : i32
    %c0_i32_1 = arith.constant 0 : i32
    return %c0_i32, %c0_i32_0 : i32, i32
  }
  func.func @transform_2(%arg0: i32, %arg1: i32) -> (i32, i32) {
    %c0_i32 = arith.constant 0 : i32
    %c0_i32_0 = arith.constant 0 : i32
    %c0_i32_1 = arith.constant 0 : i32
    return %c0_i32, %c0_i32_0 : i32, i32
  }
  func.func @transform_3(%arg0: i32, %arg1: i32) -> (i32, i32) {
    %c0_i32 = arith.constant 0 : i32
    %c0_i32_0 = arith.constant 0 : i32
    %c0_i32_1 = arith.constant 0 : i32
    return %c0_i32, %c0_i32_0 : i32, i32
  }
  func.func @transform_4(%arg0: i32, %arg1: i32) -> (i32, i32) {
    %c0_i32 = arith.constant 0 : i32
    %c0_i32_0 = arith.constant 0 : i32
    %c0_i32_1 = arith.constant 0 : i32
    return %c0_i32, %c0_i32_0 : i32, i32
  }
  func.func @transform_5(%arg0: i32, %arg1: i32) -> (i32, i32) {
    %c0_i32 = arith.constant 0 : i32
    %c0_i32_0 = arith.constant 0 : i32
    return %arg0, %c0_i32 : i32, i32
  }
}

</mosaic_0001>

<bundles_post_ra>
// kernel: tpu_custom_call.1
= control target key start
LH: loop header
LB: loop body
LE: loop exit
PB: predicated region body
PF: predicated region fallthrough
CT: control target
= control target key end

     0   :  { %v176_v0 = vmov 0.0   ;;  %vm45_vm0 = vcmask 1043456   ;;  %vm57_vm1 = vcmask 125952   ;;  %v85_v28 = vlaneseq  ;;  %s237_s0 = inlined_call_operand.vmem [shape: f32[2,4,256], index: 0, kind: input, shape index: {}]   ;;  %s238_s1 = inlined_call_operand.vmem [shape: f32[4,16], index: 1, kind: input, shape index: {}]   ;;  %s239_s2 = inlined_call_operand.vmem [shape: f32[1,16], index: 2, kind: input, shape index: {}]   ;;  %s240_s4 = inlined_call_operand.<no memory space> [shape: f32[1,1], index: 4, kind: input, shape index: {}]   ;;  %s241_s3 = inlined_call_operand.vmem [shape: f32[16,1], index: 3, kind: input, shape index: {}]   ;;  %s242_s5 = inlined_call_operand.vmem [shape: f32[2,1], index: 5, kind: output, shape index: {}]  }
   0x1   :  { %27 = vst [vmem:[#allocation2 + $0x4] sm:$0xf] %v176_v0  ;;  %v29_v1 = vld [vmem:[%s237_s0 + $0x8] sm:$0xf]  ;;  %26 = vst [vmem:[#allocation2] sm:$0xf] %v176_v0  ;;  %v10_v34 = vstv %s240_s4 }
   0x2   :  { %v31_v2 = vld [vmem:[%s237_s0 + $0xc] sm:$0xf]  ;;  %v28_v3 = vld [vmem:[%s237_s0] sm:$0xf]  ;;  %v30_v4 = vld [vmem:[%s237_s0 + $0x4] sm:$0xf] }
   0x3   :  { %v33_v5 = vadd.f32 %v31_v2, %v29_v1  ;;  %v32_v6 = vadd.f32 %v30_v4, %v28_v3  ;;  %v54_v15 = vld [vmem:[%s238_s1] sm:$0xf]  ;;  %v86_v33 = vshrl.u32 %v85_v28, 7  ;;  %11 = vst [vmem:[#allocation3] sm:$0x1] %v10_v34  ;;  %v84_v49 = vld [vmem:[%s241_s3 + $0x8] sm:$0xff] }
   0x4   :  { %v163_v35 = vld [vmem:[%s239_s2] ss:$0 sm:$0xff]  ;;  %vm111_vm2 = vcmask 7168   ;;  %vm154_vm3 = vcmask 1041409   ;;  %vm157_vm4 = vcmask 1024  }
   0x5   :  { %v87_v39 = vsub.s32 0, %v86_v33  ;;  %v83_v47 = vld [vmem:[%s241_s3] sm:$0xff] }
   0x8   :  { %v35_v7 = vld [vmem:[#allocation2 + $0x4] sm:$0xf]  ;;  %v34_v8 = vld [vmem:[#allocation2] sm:$0xf] }
   0x9   :  { %v37_v9 = vadd.f32 %v35_v7, %v33_v5  ;;  %v36_v10 = vadd.f32 %v34_v8, %v32_v6 }
   0xa   :  { %v164_v7 = vld [vmem:[#allocation3] ss:$0 sm:$0xff] }
   0xb   :  { %39 = vst [vmem:[#allocation2 + $0x4] sm:$0xf] %v37_v9  ;;  %38 = vst [vmem:[#allocation2] sm:$0xf] %v36_v10 }
  0x12   :  { %v44_v11 = vld [vmem:[#allocation2 + $0x4] sm:$0xf]  ;;  %v43_v12 = vld [vmem:[#allocation2] sm:$0xf] }
  0x13   :  { %v49_v13 = vsel %vm45_vm0, %v44_v11, 0.0  ;;  %v46_v14 = vsel %vm45_vm0, %v43_v12, 0.0 }
  0x14   :  { %50 = vadd.xlane.f32.xlu0 %v49_v13 }
  0x18   :  { %47 = vadd.xlane.f32.xlu0 %v46_v14 }
  0xa1   :  { %v51_v16 = vpop.xlane.xlu0 %50 }
  0xa2   :  { %v53_v17 = vmul.f32 0.00390625, %v51_v16 }
  0xa4   :  { %v56_v18 = vmul.f32 %v54_v15, %v53_v17 }
  0xa5   :  { %v48_v19 = vpop.xlane.xlu0 %47 }
  0xa6   :  { %v65_v20 = vsel %vm57_vm1, %v56_v18, 0.0  ;;  %v52_v21 = vmul.f32 0.00390625, %v48_v19 }
  0xa7   :  { %v66_v22 = vrot.slane %v65_v20, 4 }
  0xa8   :  { %v55_v23 = vmul.f32 %v54_v15, %v52_v21 }
  0xa9   :  { %v67_v24 = vadd.f32 %v66_v22, %v65_v20 }
  0xaa   :  { %v58_v25 = vsel %vm57_vm1, %v55_v23, 0.0 }
  0xab   :  { %v68_v26 = vrot.slane %v67_v24, 2  ;;  %v59_v27 = vrot.slane %v58_v25, 4 }
  0xad   :  { %v69_v29 = vadd.f32 %v68_v26, %v67_v24  ;;  %v60_v30 = vadd.f32 %v59_v27, %v58_v25 }
  0xaf   :  { %v61_v31 = vrot.slane %v60_v30, 2  ;;  %v70_v32 = vrot.slane %v69_v29, 1 }
  0xb1   :  { %v62_v36 = vadd.f32 %v61_v31, %v60_v30  ;;  %v71_v37 = vadd.f32 %v70_v32, %v69_v29 }
  0xb3   :  { %v80_v38 = vadd.f32 %v163_v35, %v71_v37  ;;  %v63_v40 = vrot.slane %v62_v36, 1 }
  0xb5   :  { %v82_v41 = vmax.f32 %v80_v38, 0.0  ;;  %v64_v42 = vadd.f32 %v63_v40, %v62_v36 }
  0xb7   :  { %v99_v43 = vrot.slane %v82_v41, %v87_v39  ;;  %v79_v44 = vadd.f32 %v163_v35, %v64_v42 }
  0xb9   :  { %101 = vbcast.lane.b32.xlu1 %v99_v43, 256  ;;  %v81_v45 = vmax.f32 %v79_v44, 0.0 }
  0xbb   :  { %v88_v46 = vrot.slane %v81_v45, %v87_v39 }
  0xbd   :  { %105 = vbcast.lane.b32.xlu1 %v99_v43, 264  ;;  %90 = vbcast.lane.b32.xlu0 %v88_v46, 256 }
  0xc1   :  { %94 = vbcast.lane.b32.xlu1 %v88_v46, 264 }
 0x12b   :  { %v102_v48 = vpop.permute.xlu1 %101 }
 0x12c   :  { %v109_v50 = vmul.f32 %v102_v48, %v83_v47 }
 0x12e   :  { %v121_v54 = vsel %vm111_vm2, %v109_v50, 0.0 }
 0x12f   :  { %v106_v51 = vpop.permute.xlu1 %105  ;;  %v91_v52 = vpop.permute.xlu0 %90 }
 0x130   :  { %v110_v53 = vmul.f32 %v106_v51, %v84_v49  ;;  %v107_v56 = vmul.f32 %v91_v52, %v83_v47 }
 0x132   :  { %v122_v55 = vsel %vm111_vm2, %v110_v53, 0.0  ;;  %v112_v61 = vsel %vm111_vm2, %v107_v56, 0.0 }
 0x133   :  { %v123_v57 = vadd.f32 %v122_v55, %v121_v54  ;;  %v95_v58 = vpop.permute.xlu1 %94 }
 0x134   :  { %v108_v59 = vmul.f32 %v95_v58, %v84_v49 }
 0x135   :  { %v124_v60 = vrot.slane %v123_v57, 4 }
 0x136   :  { %v113_v62 = vsel %vm111_vm2, %v108_v59, 0.0 }
 0x137   :  { %v125_v63 = vadd.f32 %v124_v60, %v123_v57  ;;  %v114_v0 = vadd.f32 %v113_v62, %v112_v61 }
 0x139   :  { %v126_v1 = vrot.slane %v125_v63, 2  ;;  %v115_v2 = vrot.slane %v114_v0, 4 }
 0x13b   :  { %v127_v3 = vadd.f32 %v126_v1, %v125_v63  ;;  %v116_v4 = vadd.f32 %v115_v2, %v114_v0 }
 0x13d   :  { %v128_v5 = vrot.slane %v127_v3, 1  ;;  %v117_v6 = vrot.slane %v116_v4, 2 }
 0x13f   :  { %v129_v8 = vadd.f32 %v128_v5, %v127_v3  ;;  %v118_v9 = vadd.f32 %v117_v6, %v116_v4 }
 0x141   :  { %v138_v10 = vadd.f32 %v164_v7, %v129_v8  ;;  %v119_v11 = vrot.slane %v118_v9, 1 }
 0x143   :  { %v166_v12 = vmul.f32 -1.442695, %v138_v10  ;;  %v120_v13 = vadd.f32 %v119_v11, %v118_v9 }
 0x145   :  { %168 = vpow2.f32 %v166_v12  ;;  %v137_v14 = vadd.f32 %v164_v7, %v120_v13 }
 0x147   :  { %v165_v15 = vmul.f32 -1.442695, %v137_v14 }
 0x149   :  { %170 = vpow2.f32 %v165_v15 }
 0x14f   :  { %v169_v16 = vpop.eup %168 }
 0x150   :  { %v146_v17 = vadd.f32 1.0, %v169_v16 }
 0x152   :  { %172 = vrcp.f32 %v146_v17 }
 0x153   :  { %v171_v18 = vpop.eup %170 }
 0x154   :  { %v145_v19 = vadd.f32 1.0, %v171_v18 }
 0x156   :  { %174 = vrcp.f32 %v145_v19 }
 0x15c   :  { %v173_v20 = vpop.eup %172 }
 0x15d   :  { %v153_v21 = vrot.slane %v173_v20, 7 }
 0x160   :  { %v175_v22 = vpop.eup %174 }
 0x161   :  { %v155_v23 = vsel %vm154_vm3, %v153_v21, %v175_v22 }
 0x162   :  { %158 = vst.msk [vmem:[%s242_s5] sm:$0x3] %vm157_vm4, %v155_v23 }

</bundles_post_ra>
